<compile_context>
chip_gen: v7x
topology: tpu7x:2x2x1
jax: 0.10.0
libtpu: 0.0.40
codegen_flags: <defaults>
</compile_context>

<pallas_src>
import functools

import jax
import jax.numpy as jnp
from jax.experimental import pallas as pl
from jax.experimental.pallas import tpu as pltpu


# --------------------------------------------------------------------------
# Kernel A: fused Q/K/V input projections (computed once, not per q-tile).
# --------------------------------------------------------------------------
def _proj_kernel(q_ref, k_ref, v_ref, pos_ref,
                 wq_ref, bq_ref, wk_ref, bk_ref, wv_ref, bv_ref,
                 qp_ref, kp_ref, vp_ref):
    """One grid step = (one batch element, one seq tile); all matmuls K=D."""
    q = q_ref[0]          # (TS, D) bf16
    k = k_ref[0]
    v = v_ref[0]

    # bf16 MXU operands, f32 accumulation; 1/sqrt(depth) already folded into
    # wq/bq host-side, pos already tiled to (S, D) host-side.
    qp = jnp.dot(q, wq_ref[...], preferred_element_type=jnp.float32) + bq_ref[...]
    kp = (jnp.dot(k, wk_ref[...], preferred_element_type=jnp.float32)
          + bk_ref[...] + pos_ref[...])
    vp = jnp.dot(v, wv_ref[...], preferred_element_type=jnp.float32) + bv_ref[...]

    qp_ref[0] = qp.astype(qp_ref.dtype)
    kp_ref[0] = kp.astype(kp_ref.dtype)
    vp_ref[0] = vp.astype(vp_ref.dtype)


# --------------------------------------------------------------------------
# Kernel B: batched-head attention + output projection.
# --------------------------------------------------------------------------
def _attn_kernel(q_ref, k_ref, v_ref, wfc_ref, bfc_ref, o_ref,
                 *, num_heads, exp_in_bf16):
    """One grid step = (one batch element, one q-tile); heads batched."""
    qh = q_ref[0]          # (H, TQ, depth) bf16 (scale folded)
    kh = k_ref[0]          # (H, S,  depth) bf16 (pos merged)
    vh = v_ref[0]          # (H, S,  depth) bf16

    # One batched MXU contraction for all heads (f32 accumulation).
    s = jnp.einsum('hqd,hkd->hqk', qh, kh,
                   preferred_element_type=jnp.float32)        # (H, TQ, S)

    # Numerically-stable softmax: max/sum/reciprocal stats kept in f32;
    # the exponent itself is computed in bf16 only on v6e/v7x (bf16 EUP).
    m = jnp.max(s, axis=-1, keepdims=True)
    z = s - m
    e = jnp.exp(z.astype(jnp.bfloat16)) if exp_in_bf16 else jnp.exp(z)
    denom = jnp.sum(e, axis=-1, keepdims=True, dtype=jnp.float32)
    p = (e * pl.reciprocal(denom, approx=True)).astype(jnp.bfloat16)

    ctx = jnp.einsum('hqk,hkd->hqd', p, vh,
                     preferred_element_type=jnp.float32)      # (H, TQ, depth)
    ctx = ctx.astype(jnp.bfloat16)

    # Output projection: out = sum_h ctx[h] @ Wfc[h] + bfc.  Same total FLOPs
    # as a single K=D matmul; the accumulator keeps live state at (TQ, D) and
    # the final store is a full-width lane-dense (TQ, D) slab.
    acc = bfc_ref[...]                                        # (1, D) f32
    for h in range(num_heads):
        acc = acc + jnp.dot(ctx[h], wfc_ref[h],
                            preferred_element_type=jnp.float32)
    o_ref[0] = acc.astype(o_ref.dtype)


def _pick_tile(S, target):
    """Largest tile <= target that divides S (multiple of 8 when tiling)."""
    if S <= target:
        return S
    for t in range(target, 7, -8):
        if S % t == 0 and t % 8 == 0:
            return t
    return S


def relative_positional_encoding_attention(q, k, v, pos, params, num_heads):
    """params = (wq, bq, wk, bk, wv, bv, wfc, bfc) with W:(D,D), b:(1,D)."""
    B, S, D = q.shape
    depth = D // num_heads
    wq, bq, wk, bk, wv, bv, wfc, bfc = params

    kind = jax.devices()[0].device_kind.lower()
    v6_plus = ("v6" in kind) or ("v7" in kind)   # bf16 EUP / 256-wide MXU

    # ---- host-side prep (one-time) ----------------------------------------
    scale = 1.0 / (float(depth) ** 0.5)
    wq_bf = (wq * scale).astype(jnp.bfloat16)     # fold 1/sqrt(depth) into Wq/bq
    bq_s = bq * scale
    wk_bf = wk.astype(jnp.bfloat16)
    wv_bf = wv.astype(jnp.bfloat16)
    wfc_r = wfc.reshape(num_heads, depth, D).astype(jnp.bfloat16)  # (H,depth,D)
    pos_tiled = jnp.tile(pos, (1, num_heads)).astype(jnp.float32)  # (S, D)

    q_bf = q.astype(jnp.bfloat16)
    k_bf = k.astype(jnp.bfloat16)
    v_bf = v.astype(jnp.bfloat16)

    # ---- Kernel A: fused input projections ---------------------------------
    TS = _pick_tile(S, 256)
    ns = S // TS

    x_spec = pl.BlockSpec((1, TS, D), lambda b, t: (b, t, 0))
    pos_spec = pl.BlockSpec((TS, D), lambda b, t: (t, 0))
    w_spec = pl.BlockSpec((D, D), lambda b, t: (0, 0))
    b_spec = pl.BlockSpec((1, D), lambda b, t: (0, 0))

    proj_cost = pl.CostEstimate(
        flops=int(6 * B * S * D * D),
        transcendentals=0,
        bytes_accessed=int(6 * B * S * D * 2 + 3 * D * D * 2
                           + S * D * 4 + 3 * D * 4))

    qp, kp, vp = pl.pallas_call(
        _proj_kernel,
        out_shape=(jax.ShapeDtypeStruct((B, S, D), jnp.bfloat16),
                   jax.ShapeDtypeStruct((B, S, D), jnp.bfloat16),
                   jax.ShapeDtypeStruct((B, S, D), jnp.bfloat16)),
        grid=(B, ns),
        in_specs=[x_spec, x_spec, x_spec, pos_spec,
                  w_spec, b_spec, w_spec, b_spec, w_spec, b_spec],
        out_specs=[x_spec, x_spec, x_spec],
        compiler_params=pltpu.CompilerParams(
            dimension_semantics=("parallel", "parallel"),
            vmem_limit_bytes=64 * 1024 * 1024),
        cost_estimate=proj_cost,
    )(q_bf, k_bf, v_bf, pos_tiled, wq_bf, bq_s, wk_bf, bk, wv_bf, bv)

    # ---- one-time XLA head split: (B,S,D) -> (B,H,S,depth) ----------------
    def to_heads(x):
        return x.reshape(B, S, num_heads, depth).transpose(0, 2, 1, 3)

    qh, kh, vh = to_heads(qp), to_heads(kp), to_heads(vp)

    # ---- Kernel B: attention + output projection ---------------------------
    tq_target = 256 if v6_plus else 128     # v5e MXU is 128-wide; v6e/v7x 256
    TQ = _pick_tile(S, tq_target)
    nq = S // TQ

    qh_spec = pl.BlockSpec((1, num_heads, TQ, depth), lambda b, t: (b, 0, t, 0))
    kv_spec = pl.BlockSpec((1, num_heads, S, depth), lambda b, t: (b, 0, 0, 0))
    wfc_spec = pl.BlockSpec((num_heads, depth, D), lambda b, t: (0, 0, 0))
    bfc_spec = pl.BlockSpec((1, D), lambda b, t: (0, 0))
    # NOTE: f32 output kept to match the reference; emit bf16 here if the
    # downstream consumer allows (halves HBM writeback).
    out_spec = pl.BlockSpec((1, TQ, D), lambda b, t: (b, t, 0))

    attn_cost = pl.CostEstimate(
        flops=int(4 * B * S * S * D + 2 * B * S * D * D),
        transcendentals=int(B * num_heads * S * S),
        bytes_accessed=int(B * S * D * 2 * (1 + 2 * nq)
                           + D * D * 2 + D * 4 + B * S * D * 4))

    kernel = functools.partial(_attn_kernel, num_heads=num_heads,
                               exp_in_bf16=v6_plus)

    out = pl.pallas_call(
        kernel,
        out_shape=jax.ShapeDtypeStruct((B, S, D), jnp.float32),
        grid=(B, nq),
        in_specs=[qh_spec, kv_spec, kv_spec, wfc_spec, bfc_spec],
        out_specs=out_spec,
        compiler_params=pltpu.CompilerParams(
            dimension_semantics=("parallel", "parallel"),
            vmem_limit_bytes=64 * 1024 * 1024),
        cost_estimate=attn_cost,
    )(qh, kh, vh, wfc_r, bfc)

    return out


def _reference(q, k, v, pos, params, num_heads):
    """Plain-JAX f32 reference mirroring the PyTorch forward."""
    wq, bq, wk, bk, wv, bv, wfc, bfc = params
    B, S, D = q.shape
    depth = D // num_heads

    def proj(x, w, b):
        y = x @ w + b                                   # (B, S, D)
        return y.reshape(B, S, num_heads, depth).transpose(0, 2, 1, 3)

    qh = proj(q, wq, bq)                                # (B, H, S, depth)
    kh = proj(k, wk, bk)
    vh = proj(v, wv, bv)

    rel = jnp.einsum('bhsd,td->bhst', qh, pos)          # q @ pos^T
    scores = jnp.einsum('bhsd,bhtd->bhst', qh, kh) + rel
    scores = scores / jnp.sqrt(jnp.float32(depth))
    attn = jax.nn.softmax(scores, axis=-1)
    out = jnp.einsum('bhst,bhtd->bhsd', attn, vh)       # (B, H, S, depth)
    out = out.transpose(0, 2, 1, 3).reshape(B, S, D)
    return out @ wfc + bfc


if __name__ == "__main__":
    B, S, d_model, num_heads = 2, 8, 32, 4
    depth = d_model // num_heads

    key = jax.random.PRNGKey(0)
    ks = jax.random.split(key, 12)

    q = jax.random.normal(ks[0], (B, S, d_model), jnp.float32)
    k = jax.random.normal(ks[1], (B, S, d_model), jnp.float32)
    v = jax.random.normal(ks[2], (B, S, d_model), jnp.float32)
    pos = jax.random.normal(ks[3], (S, depth), jnp.float32)

    def init_linear(kw, kb):
        bound = 1.0 / (d_model ** 0.5)
        w = jax.random.uniform(kw, (d_model, d_model), jnp.float32, -bound, bound)
        b = jax.random.uniform(kb, (1, d_model), jnp.float32, -bound, bound)
        return w, b

    wq, bq = init_linear(ks[4], ks[5])
    wk, bk = init_linear(ks[6], ks[7])
    wv, bv = init_linear(ks[8], ks[9])
    wfc, bfc = init_linear(ks[10], ks[11])
    params = (wq, bq, wk, bk, wv, bv, wfc, bfc)

    out = relative_positional_encoding_attention(q, k, v, pos, params, num_heads)
    out = jax.block_until_ready(out)

    ref = _reference(q, k, v, pos, params, num_heads)
    assert out.shape == (B, S, d_model)
    # bf16 MXU operands + approx reciprocal => loosened tolerance vs f32 ref.
    assert jnp.allclose(out, ref, atol=5e-2, rtol=5e-2), "mismatch vs reference"

    print("KERNEL_OK")
</pallas_src>

<mosaic_0001>
module attributes {stable_mosaic.version = 11 : i64} {
  func.func @_proj_kernel(%arg0: i32, %arg1: i32, %arg2: memref<1x8x32xbf16, #tpu.memory_space<vmem>>, %arg3: memref<1x8x32xbf16, #tpu.memory_space<vmem>>, %arg4: memref<1x8x32xbf16, #tpu.memory_space<vmem>>, %arg5: memref<8x32xf32, #tpu.memory_space<vmem>>, %arg6: memref<32x32xbf16, #tpu.memory_space<vmem>>, %arg7: memref<1x32xf32, #tpu.memory_space<vmem>>, %arg8: memref<32x32xbf16, #tpu.memory_space<vmem>>, %arg9: memref<1x32xf32, #tpu.memory_space<vmem>>, %arg10: memref<32x32xbf16, #tpu.memory_space<vmem>>, %arg11: memref<1x32xf32, #tpu.memory_space<vmem>>, %arg12: memref<1x8x32xbf16, #tpu.memory_space<vmem>>, %arg13: memref<1x8x32xbf16, #tpu.memory_space<vmem>>, %arg14: memref<1x8x32xbf16, #tpu.memory_space<vmem>>) attributes {dimension_semantics = [#tpu.dimension_semantics<parallel>, #tpu.dimension_semantics<parallel>], iteration_bounds = array<i64: 2, 1>, scalar_prefetch = 0 : i64, scratch_operands = 0 : i64, tpu.core_type = #tpu.core_type<tc>, window_params = [{transform_indices = @transform_0, window_bounds = array<i64: 1, 8, 32>}, {transform_indices = @transform_1, window_bounds = array<i64: 1, 8, 32>}, {transform_indices = @transform_2, window_bounds = array<i64: 1, 8, 32>}, {transform_indices = @transform_3, window_bounds = array<i64: 8, 32>}, {pipeline_mode = #tpu.pipeline_mode<synchronous>, transform_indices = @transform_4, window_bounds = array<i64: 32, 32>}, {pipeline_mode = #tpu.pipeline_mode<synchronous>, transform_indices = @transform_5, window_bounds = array<i64: 1, 32>}, {pipeline_mode = #tpu.pipeline_mode<synchronous>, transform_indices = @transform_6, window_bounds = array<i64: 32, 32>}, {pipeline_mode = #tpu.pipeline_mode<synchronous>, transform_indices = @transform_7, window_bounds = array<i64: 1, 32>}, {pipeline_mode = #tpu.pipeline_mode<synchronous>, transform_indices = @transform_8, window_bounds = array<i64: 32, 32>}, {pipeline_mode = #tpu.pipeline_mode<synchronous>, transform_indices = @transform_9, window_bounds = array<i64: 1, 32>}, {transform_indices = @transform_10, window_bounds = array<i64: 1, 8, 32>}, {transform_indices = @transform_11, window_bounds = array<i64: 1, 8, 32>}, {transform_indices = @transform_12, window_bounds = array<i64: 1, 8, 32>}]} {
    %c0 = arith.constant 0 : index
    %c0_0 = arith.constant 0 : index
    %c0_1 = arith.constant 0 : index
    %0 = vector.load %arg2[%c0, %c0_0, %c0_1] : memref<1x8x32xbf16, #tpu.memory_space<vmem>>, vector<1x8x32xbf16>
    %1 = vector.shape_cast %0 : vector<1x8x32xbf16> to vector<8x32xbf16>
    %c0_2 = arith.constant 0 : index
    %c0_3 = arith.constant 0 : index
    %c0_4 = arith.constant 0 : index
    %2 = vector.load %arg3[%c0_2, %c0_3, %c0_4] : memref<1x8x32xbf16, #tpu.memory_space<vmem>>, vector<1x8x32xbf16>
    %3 = vector.shape_cast %2 : vector<1x8x32xbf16> to vector<8x32xbf16>
    %c0_5 = arith.constant 0 : index
    %c0_6 = arith.constant 0 : index
    %c0_7 = arith.constant 0 : index
    %4 = vector.load %arg4[%c0_5, %c0_6, %c0_7] : memref<1x8x32xbf16, #tpu.memory_space<vmem>>, vector<1x8x32xbf16>
    %5 = vector.shape_cast %4 : vector<1x8x32xbf16> to vector<8x32xbf16>
    %c0_8 = arith.constant 0 : index
    %c0_9 = arith.constant 0 : index
    %6 = vector.load %arg6[%c0_8, %c0_9] : memref<32x32xbf16, #tpu.memory_space<vmem>>, vector<32x32xbf16>
    %cst = arith.constant dense<0.000000e+00> : vector<8x32xf32>
    %7 = tpu.matmul %1, %6, %cst {dimension_numbers = #tpu.dot_dimension_numbers<[1], [0], [0], [1], [0, 0, 1, 1], [], []>} : vector<8x32xbf16>, vector<32x32xbf16>, vector<8x32xf32> -> vector<8x32xf32>
    %c0_10 = arith.constant 0 : index
    %c0_11 = arith.constant 0 : index
    %8 = vector.load %arg7[%c0_10, %c0_11] : memref<1x32xf32, #tpu.memory_space<vmem>>, vector<1x32xf32>
    %9 = vector.broadcast %8 : vector<1x32xf32> to vector<8x32xf32>
    %10 = arith.addf %7, %9 : vector<8x32xf32>
    %c0_12 = arith.constant 0 : index
    %c0_13 = arith.constant 0 : index
    %11 = vector.load %arg8[%c0_12, %c0_13] : memref<32x32xbf16, #tpu.memory_space<vmem>>, vector<32x32xbf16>
    %cst_14 = arith.constant dense<0.000000e+00> : vector<8x32xf32>
    %12 = tpu.matmul %3, %11, %cst_14 {dimension_numbers = #tpu.dot_dimension_numbers<[1], [0], [0], [1], [0, 0, 1, 1], [], []>} : vector<8x32xbf16>, vector<32x32xbf16>, vector<8x32xf32> -> vector<8x32xf32>
    %c0_15 = arith.constant 0 : index
    %c0_16 = arith.constant 0 : index
    %13 = vector.load %arg9[%c0_15, %c0_16] : memref<1x32xf32, #tpu.memory_space<vmem>>, vector<1x32xf32>
    %14 = vector.broadcast %13 : vector<1x32xf32> to vector<8x32xf32>
    %15 = arith.addf %12, %14 : vector<8x32xf32>
    %c0_17 = arith.constant 0 : index
    %c0_18 = arith.constant 0 : index
    %16 = vector.load %arg5[%c0_17, %c0_18] : memref<8x32xf32, #tpu.memory_space<vmem>>, vector<8x32xf32>
    %17 = arith.addf %15, %16 : vector<8x32xf32>
    %c0_19 = arith.constant 0 : index
    %c0_20 = arith.constant 0 : index
    %18 = vector.load %arg10[%c0_19, %c0_20] : memref<32x32xbf16, #tpu.memory_space<vmem>>, vector<32x32xbf16>
    %cst_21 = arith.constant dense<0.000000e+00> : vector<8x32xf32>
    %19 = tpu.matmul %5, %18, %cst_21 {dimension_numbers = #tpu.dot_dimension_numbers<[1], [0], [0], [1], [0, 0, 1, 1], [], []>} : vector<8x32xbf16>, vector<32x32xbf16>, vector<8x32xf32> -> vector<8x32xf32>
    %c0_22 = arith.constant 0 : index
    %c0_23 = arith.constant 0 : index
    %20 = vector.load %arg11[%c0_22, %c0_23] : memref<1x32xf32, #tpu.memory_space<vmem>>, vector<1x32xf32>
    %21 = vector.broadcast %20 : vector<1x32xf32> to vector<8x32xf32>
    %22 = arith.addf %19, %21 : vector<8x32xf32>
    %23 = arith.truncf %10 : vector<8x32xf32> to vector<8x32xbf16>
    %c0_24 = arith.constant 0 : index
    %c0_25 = arith.constant 0 : index
    %c0_26 = arith.constant 0 : index
    %24 = vector.load %arg12[%c0_24, %c0_25, %c0_26] : memref<1x8x32xbf16, #tpu.memory_space<vmem>>, vector<1x8x32xbf16>
    %25 = vector.shape_cast %24 : vector<1x8x32xbf16> to vector<8x32xbf16>
    %26 = vector.shape_cast %23 : vector<8x32xbf16> to vector<1x8x32xbf16>
    tpu.vector_store %arg12[%c0_24, %c0_25, %c0_26], %26 {strides = array<i32>} : memref<1x8x32xbf16, #tpu.memory_space<vmem>>, vector<1x8x32xbf16>,
    %27 = arith.truncf %17 : vector<8x32xf32> to vector<8x32xbf16>
    %c0_27 = arith.constant 0 : index
    %c0_28 = arith.constant 0 : index
    %c0_29 = arith.constant 0 : index
    %28 = vector.load %arg13[%c0_27, %c0_28, %c0_29] : memref<1x8x32xbf16, #tpu.memory_space<vmem>>, vector<1x8x32xbf16>
    %29 = vector.shape_cast %28 : vector<1x8x32xbf16> to vector<8x32xbf16>
    %30 = vector.shape_cast %27 : vector<8x32xbf16> to vector<1x8x32xbf16>
    tpu.vector_store %arg13[%c0_27, %c0_28, %c0_29], %30 {strides = array<i32>} : memref<1x8x32xbf16, #tpu.memory_space<vmem>>, vector<1x8x32xbf16>,
    %31 = arith.truncf %22 : vector<8x32xf32> to vector<8x32xbf16>
    %c0_30 = arith.constant 0 : index
    %c0_31 = arith.constant 0 : index
    %c0_32 = arith.constant 0 : index
    %32 = vector.load %arg14[%c0_30, %c0_31, %c0_32] : memref<1x8x32xbf16, #tpu.memory_space<vmem>>, vector<1x8x32xbf16>
    %33 = vector.shape_cast %32 : vector<1x8x32xbf16> to vector<8x32xbf16>
    %34 = vector.shape_cast %31 : vector<8x32xbf16> to vector<1x8x32xbf16>
    tpu.vector_store %arg14[%c0_30, %c0_31, %c0_32], %34 {strides = array<i32>} : memref<1x8x32xbf16, #tpu.memory_space<vmem>>, vector<1x8x32xbf16>,
    return
  }
  func.func @transform_0(%arg0: i32, %arg1: i32) -> (i32, i32, i32) {
    %c0_i32 = arith.constant 0 : i32
    %c0_i32_0 = arith.constant 0 : i32
    return %arg0, %arg1, %c0_i32 : i32, i32, i32
  }
  func.func @transform_1(%arg0: i32, %arg1: i32) -> (i32, i32, i32) {
    %c0_i32 = arith.constant 0 : i32
    %c0_i32_0 = arith.constant 0 : i32
    return %arg0, %arg1, %c0_i32 : i32, i32, i32
  }
  func.func @transform_2(%arg0: i32, %arg1: i32) -> (i32, i32, i32) {
    %c0_i32 = arith.constant 0 : i32
    %c0_i32_0 = arith.constant 0 : i32
    return %arg0, %arg1, %c0_i32 : i32, i32, i32
  }
  func.func @transform_3(%arg0: i32, %arg1: i32) -> (i32, i32) {
    %c0_i32 = arith.constant 0 : i32
    %c0_i32_0 = arith.constant 0 : i32
    return %arg1, %c0_i32 : i32, i32
  }
  func.func @transform_4(%arg0: i32, %arg1: i32) -> (i32, i32) {
    %c0_i32 = arith.constant 0 : i32
    %c0_i32_0 = arith.constant 0 : i32
    %c0_i32_1 = arith.constant 0 : i32
    return %c0_i32, %c0_i32_0 : i32, i32
  }
  func.func @transform_5(%arg0: i32, %arg1: i32) -> (i32, i32) {
    %c0_i32 = arith.constant 0 : i32
    %c0_i32_0 = arith.constant 0 : i32
    %c0_i32_1 = arith.constant 0 : i32
    return %c0_i32, %c0_i32_0 : i32, i32
  }
  func.func @transform_6(%arg0: i32, %arg1: i32) -> (i32, i32) {
    %c0_i32 = arith.constant 0 : i32
    %c0_i32_0 = arith.constant 0 : i32
    %c0_i32_1 = arith.constant 0 : i32
    return %c0_i32, %c0_i32_0 : i32, i32
  }
  func.func @transform_7(%arg0: i32, %arg1: i32) -> (i32, i32) {
    %c0_i32 = arith.constant 0 : i32
    %c0_i32_0 = arith.constant 0 : i32
    %c0_i32_1 = arith.constant 0 : i32
    return %c0_i32, %c0_i32_0 : i32, i32
  }
  func.func @transform_8(%arg0: i32, %arg1: i32) -> (i32, i32) {
    %c0_i32 = arith.constant 0 : i32
    %c0_i32_0 = arith.constant 0 : i32
    %c0_i32_1 = arith.constant 0 : i32
    return %c0_i32, %c0_i32_0 : i32, i32
  }
  func.func @transform_9(%arg0: i32, %arg1: i32) -> (i32, i32) {
    %c0_i32 = arith.constant 0 : i32
    %c0_i32_0 = arith.constant 0 : i32
    %c0_i32_1 = arith.constant 0 : i32
    return %c0_i32, %c0_i32_0 : i32, i32
  }
  func.func @transform_10(%arg0: i32, %arg1: i32) -> (i32, i32, i32) {
    %c0_i32 = arith.constant 0 : i32
    %c0_i32_0 = arith.constant 0 : i32
    return %arg0, %arg1, %c0_i32 : i32, i32, i32
  }
  func.func @transform_11(%arg0: i32, %arg1: i32) -> (i32, i32, i32) {
    %c0_i32 = arith.constant 0 : i32
    %c0_i32_0 = arith.constant 0 : i32
    return %arg0, %arg1, %c0_i32 : i32, i32, i32
  }
  func.func @transform_12(%arg0: i32, %arg1: i32) -> (i32, i32, i32) {
    %c0_i32 = arith.constant 0 : i32
    %c0_i32_0 = arith.constant 0 : i32
    return %arg0, %arg1, %c0_i32 : i32, i32, i32
  }
}

</mosaic_0001>

<bundles_post_ra>
// kernel: tpu_custom_call.1
= control target key start
LH: loop header
LB: loop body
LE: loop exit
PB: predicated region body
PF: predicated region fallthrough
CT: control target
= control target key end

     0   :  { %s2479_s0 = inlined_call_operand.hbm [shape: bf16[2,8,32], index: 0, kind: input, shape index: {}]   ;;  %s2480_s1 = inlined_call_operand.hbm [shape: bf16[2,8,32], index: 1, kind: input, shape index: {}]   ;;  %s2481_s2 = inlined_call_operand.hbm [shape: bf16[2,8,32], index: 2, kind: input, shape index: {}]   ;;  %s2482_s3 = inlined_call_operand.hbm [shape: f32[8,32], index: 3, kind: input, shape index: {}]   ;;  %s2483_s4 = inlined_call_operand.hbm [shape: bf16[32,32], index: 4, kind: input, shape index: {}]   ;;  %s2484_s5 = inlined_call_operand.hbm [shape: f32[1,32], index: 5, kind: input, shape index: {}]   ;;  %s2485_s6 = inlined_call_operand.hbm [shape: bf16[32,32], index: 6, kind: input, shape index: {}]   ;;  %s2486_s7 = inlined_call_operand.hbm [shape: f32[1,32], index: 7, kind: input, shape index: {}]   ;;  %s2487_s8 = inlined_call_operand.hbm [shape: bf16[32,32], index: 8, kind: input, shape index: {}]   ;;  %s2488_s9 = inlined_call_operand.hbm [shape: f32[1,32], index: 9, kind: input, shape index: {}]   ;;  %s2489_s10 = inlined_call_operand.hbm [shape: bf16[2,8,32], index: 10, kind: output, shape index: {0}]   ;;  %s2490_s11 = inlined_call_operand.hbm [shape: bf16[2,8,32], index: 11, kind: output, shape index: {1}]   ;;  %s2491_s12 = inlined_call_operand.hbm [shape: bf16[2,8,32], index: 12, kind: output, shape index: {2}]  }
   0x1   :  { %2522 = sst [smem:[#allocation42_spill]] %s2480_s1 }
   0x2   :  { %2523 = sst [smem:[#allocation43_spill]] %s2482_s3 }
   0x3   :  { %2524 = sst [smem:[#allocation44_spill]] %s2484_s5 }
   0x4   :  { %2525 = sst [smem:[#allocation45_spill]] %s2486_s7 }
   0x5   :  { %2526 = sst [smem:[#allocation46_spill]] %s2489_s10 }
   0x6   :  { %2527 = sst [smem:[#allocation47_spill]] %s2490_s11 }
   0x7   :  { %2528 = sst [smem:[#allocation48_spill]] %s2491_s12 }
   0x8   :  { %18 = vsyncpa [#allocation3], 0 }
   0x9   :  { %20 = vsyncpa [#allocation3 + $0x1], 0 }
   0xa   :  { %21 = vsyncpa [#allocation6], 0 }
   0xb   :  { %23 = vsyncpa [#allocation6 + $0x1], 0 }
   0xc   :  { %24 = vsyncpa [#allocation9], 0 }
   0xd   :  { %25 = vsyncpa [#allocation12], 0 }
   0xe   :  { %26 = vsyncpa [#allocation15], 0 }
   0xf   :  { %27 = vsyncpa [#allocation18], 0 }
  0x10   :  { %28 = vsyncpa [#allocation4], 0 }
  0x11   :  { %30 = vsyncpa [#allocation4 + $0x1], 0 }
  0x12   :  { %31 = vsyncpa [#allocation21], 0 }
  0x13   :  { %33 = vsyncpa [#allocation21 + $0x1], 0  ;;  %s1947_s21 = smov 0   ;;  %s1949_s22 = smov 0  }
  0x14   :  { %s1951_s23 = smov 0   ;;  %s1953_s24 = smov 0  }
  0x15   :  { %s1955_s25 = smov 0   ;;  %s1957_s26 = smov 0  }
  0x16 LB: > { %2529 = sst [smem:[#allocation31_spill]] %s1843_s21  ;;  %s1978_s27 = sadd.s32 4294967295, %s1863_s26   ;;  %s1863_s26 = sphi %s1957_s26, %s39_s26   ;;  %s1859_s25 = sphi %s1955_s25, %s2590_s25   ;;  %s1855_s24 = sphi %s1953_s24, %s2589_s24   ;;  %s1851_s23 = sphi %s1951_s23, %s2592_s23   ;;  %s1847_s22 = sphi %s1949_s22, %s2591_s22   ;;  %s1843_s21 = sphi %s1947_s21, %s2587_s21  }
  0x17   : > { %2530 = sst [smem:[#allocation32_spill]] %s1847_s22  ;;  %p1170_p0 = scmp.ge.s32.totalorder %s1863_s26, 1 }
  0x18   : > { %2531 = sst [smem:[#allocation33_spill]] %s1855_s24  ;;  %p2494_p1 = scmp.eq.s32.totalorder %s1978_s27, 0 }
  0x19   : > { %2532 = sst [smem:[#allocation34_spill]] %s1859_s25  ;;  %p376_p2 = scmp.lt.s32.totalorder %s1863_s26, 3 }
  0x1a   : > { %2533 = sst [smem:[#allocation35_spill]] %s1863_s26  ;;  %s1865_s29 = smov [#allocation8]  }
  0x1b   : > { %2534 = sst [smem:[#allocation36_spill]] %s1978_s27  ;;  %p1983_p3 = pnand %p1170_p0, %p376_p2 }
  0x1c   : > { %s391_s30 = sshll.u32 %s1865_s29, 4  ;;  %s1866_s13 = smov [#allocation11]   ;;  %s392_s30 = int_to_ptr.vmem [resolvable:$true] %s391_s30 }
  0x1d   : > { %s2535_s28 = scalar_select %p1983_p3, 1, 0 }
  0x1e   : > { %p1292_p5 = pneg %p1983_p3  ;;  %s415_s14 = sshll.u32 %s1866_s13, 4  ;;  %s1996_s14 = int_to_ptr.vmem [resolvable:$true] %s415_s14 }
  0x1f   : > { %s1867_s16 = smov [#allocation14]   ;;  %s2537_s3 = sld [smem:[#allocation43_spill]] }
  0x20   : > { %p1992_p6 = pnand %p1292_p5, %p2494_p1  ;;  %s439_s17 = sshll.u32 %s1867_s16, 4  ;;  %s1998_s17 = int_to_ptr.vmem [resolvable:$true] %s439_s17 }
  0x22   : > { %s2536_s15 = scalar_select %p1992_p6, 1, 0 }
  0x23   : > { %p2008_p8 = pneg %p1992_p6 }
  0x25   : > { %s1415_s20 = scalar_lea.hbm %s2537_s3, 128 }
  0x26   : > { %p1416_p7 = scmp.ne.s32.totalorder %s2537_s3, %s1415_s20  ;;  %p1422_p11 = scmp.lt.u32.totalorder %s1415_s20, %s2537_s3 }
  0x27   : > { %s2538_s13 = scalar_select %p2008_p8, 1, 0 }
  0x28   : > { %p1418_p9 = pnand %p2008_p8, %p1416_p7 }
  0x2a   : > { %p1419_p10 = pneg %p1418_p9 }
  0x2c   : > { %p1424_p12 = pnand %p1422_p11, %p1419_p10 }
  0x2e   : > { %1427 = shalt.err (!%p1424_p12)
}
  0x2f   : > { %s1428_s18 = scalar_lea.vmem %s392_s30, 128  ;;  %p1436_p5 = scmp.lt.s32.totalorder %s392_s30, %s392_s30 }
  0x30   : > { %p1429_p13 = scmp.ne.s32.totalorder %s392_s30, %s1428_s18  ;;  %p1437_p4 = scmp.lt.s32.totalorder %s1428_s18, %s1428_s18 }
  0x32   : > { %p1431_p0 = pnand %p1429_p13, %p2008_p8  ;;  %p1438_p1 = por %p1437_p4, %p1436_p5 }
  0x34   : > { %p1432_p2 = pneg %p1431_p0 }
  0x36   : > { %p1439_p3 = pnand %p1438_p1, %p1432_p2 }
  0x38   : > { %1442 = shalt.err (!%p1439_p3)
}
  0x39   : > { %1295 = dma.hbm_to_vmem [thread:$0]  (!%p1992_p6), %s2537_s3, 128, %s392_s30, [#allocation9]  }
  0x3a   : > { %s2539_s5 = sld [smem:[#allocation44_spill]] }
  0x40   : > { %s1443_s29 = scalar_lea.hbm %s2539_s5, 16 }
  0x41   : > { %p1444_p7 = scmp.ne.s32.totalorder %s2539_s5, %s1443_s29  ;;  %p1450_p1 = scmp.lt.u32.totalorder %s1443_s29, %s2539_s5 }
  0x43   : > { %p1446_p9 = pnand %p1444_p7, %p2008_p8 }
  0x45   : > { %p1447_p4 = pneg %p1446_p9 }
  0x47   : > { %p1452_p3 = pnand %p1450_p1, %p1447_p4 }
  0x49   : > { %1455 = shalt.err (!%p1452_p3)
}
  0x4a   : > { %s1456_s30 = scalar_lea.vmem %s1996_s14, 16  ;;  %s1463_s10 = scalar_lea.vmem %s1996_s14, 32 }
  0x4b   : > { %p1457_p10 = scmp.ne.s32.totalorder %s1996_s14, %s1456_s30  ;;  %p1464_p13 = scmp.lt.s32.totalorder %s1996_s14, %s1996_s14 }
  0x4c   : > { %p1465_p0 = scmp.lt.s32.totalorder %s1463_s10, %s1456_s30 }
  0x4d   : > { %p1459_p11 = pnand %p1457_p10, %p2008_p8 }
  0x4e   : > { %p1466_p2 = por %p1465_p0, %p1464_p13 }
  0x4f   : > { %p1460_p12 = pneg %p1459_p11 }
  0x51   : > { %p1467_p5 = pnand %p1466_p2, %p1460_p12 }
  0x53   : > { %1470 = shalt.err (!%p1467_p5)
}
  0x54   : > { %1301 = dma.hbm_to_vmem [thread:$0]  (!%p1992_p6), %s2539_s5, 16, %s1996_s14, [#allocation12]  }
  0x55   : > { %s2540_s7 = sld [smem:[#allocation45_spill]] }
  0x5b   : > { %s1471_s20 = scalar_lea.hbm %s2540_s7, 16 }
  0x5c   : > { %p1472_p7 = scmp.ne.s32.totalorder %s2540_s7, %s1471_s20  ;;  %p1478_p1 = scmp.lt.u32.totalorder %s1471_s20, %s2540_s7 }
  0x5e   : > { %p1474_p9 = pnand %p1472_p7, %p2008_p8 }
  0x60   : > { %p1475_p4 = pneg %p1474_p9 }
  0x62   : > { %p1480_p3 = pnand %p1478_p1, %p1475_p4 }
  0x64   : > { %1483 = shalt.err (!%p1480_p3)
}
  0x65   : > { %s1484_s14 = scalar_lea.vmem %s1998_s17, 16  ;;  %s1491_s10 = scalar_lea.vmem %s1998_s17, 32 }
  0x66   : > { %p1485_p10 = scmp.ne.s32.totalorder %s1998_s17, %s1484_s14  ;;  %p1492_p13 = scmp.lt.s32.totalorder %s1998_s17, %s1998_s17 }
  0x67   : > { %p1493_p0 = scmp.lt.s32.totalorder %s1491_s10, %s1484_s14 }
  0x68   : > { %p1487_p11 = pnand %p1485_p10, %p2008_p8 }
  0x69   : > { %p1494_p2 = por %p1493_p0, %p1492_p13 }
  0x6a   : > { %p1488_p12 = pneg %p1487_p11 }
  0x6c   : > { %p1495_p5 = pnand %p1494_p2, %p1488_p12 }
  0x6e   : > { %1498 = shalt.err (!%p1495_p5)
}
  0x6f   : > { %1307 = dma.hbm_to_vmem [thread:$0]  (!%p1992_p6), %s2540_s7, 16, %s1998_s17, [#allocation15]  }
  0x70   : > { %s2497_s19 = sadd.s32 4294967294, %s1863_s26   ;;  %s51_s11 = sadd.s32 1, %s1859_s25 }
  0x71   : > { %s60_s20 = sadd.s32 1, %s1851_s23  ;;  %p53_p7 = scmp.ge.s32.totalorder %s51_s11, 2 }
  0x72   : > { %p67_p9 = scmp.ne.s32.totalorder %s1851_s23, %s1847_s22  ;;  %p68_p4 = scmp.eq.s32.totalorder %s1863_s26, 0 }
  0x73   : > { %p73_p1 = scmp.ne.s32.totalorder %s1847_s22, %s1843_s21  ;;  %s2594_s11 = smov (%p53_p7, %s51_s11), 0 }
  0x74   : > { %2541 = sst [smem:[#allocation37_spill]] %s2594_s11  ;;  %p2082_p3 = por %p68_p4, %p67_p9 }
  0x75   : > { %p2543_p10 = scmp.eq.s32.totalorder %s1978_s27, 0  ;;  %s55_s16 = ssub.s32 %s1859_s25, %s2594_s11 }
  0x76   : > { %p307_p12 = scmp.eq.s32.totalorder %s1978_s27, 1  ;;  %p58_p13 = scmp.eq.s32.totalorder %s55_s16, 0 }
  0x77   : > { %p2088_p11 = por %p2543_p10, %p73_p1  ;;  %p313_p0 = scmp.eq.s32.totalorder %s2497_s19, 1 }
  0x78   : > { %p2097_p2 = por %p307_p12, %p67_p9  ;;  %p1341_p5 = scmp.lt.s32.totalorder %s1863_s26, 2 }
  0x79   : > { %s2544_s17 = scalar_select %p2088_p11, 1, 0 }
  0x7a   : > { %s2546_s18 = scalar_select %p2097_p2, 1, 0 }
  0x7b   : > { %2545 = sst [smem:[#allocation38_spill]] %s2544_s17  ;;  %p2105_p7 = por %p313_p0, %p73_p1 }
  0x7c   : > { %2547 = sst [smem:[#allocation39_spill]] %s2546_s18  ;;  %s2498_s10 = sand.u32 1, %s1851_s23  }
  0x7d   : > { %s2103_s30 = scalar_select %p58_p13, %s1851_s23, %s60_s20  }
  0x7e   : > { %s2549_s14 = scalar_select %p2105_p7, 1, 0 }
  0x7f   : > { %2548 = sst [smem:[#allocation40_spill]] %s2103_s30  ;;  %s2112_s24 = sshll.u32 %s2498_s10, 2 }
  0x80   : > { %2550 = sst [smem:[#allocation41_spill]] %s2549_s14  ;;  %s2115_s12 = sshll.u32 %s1859_s25, 6 }
  0x81   : > { %p2119_p9 = pnand %p1341_p5, %p2082_p3  ;;  %s493_s20 = sand.u32 1, %s1863_s26  }
  0x82   : > { %s2552_s1 = sld [smem:[#allocation42_spill]]  ;;  %s497_s10 = scalar_lea.vmem [#allocation5], %s2112_s24 }
  0x83   : > { %s2551_s16 = scalar_select %p2119_p9, 1, 0 }
  0x84   : > { %s505_s7 = sshll.u32 %s497_s10, 4  ;;  %s1868_s29 = smov [#allocation10]   ;;  %s2131_s7 = int_to_ptr.vmem [resolvable:$true] %s505_s7 }
  0x85   : > { %s2133_s11 = sshll.u32 %s1868_s29, 4  ;;  %s2135_s25 = scalar_lea.sflag [#allocation6], %s493_s20  ;;  %s402_s11 = int_to_ptr.vmem [resolvable:$true] %s2133_s11 }
  0x86   : > { %p2141_p1 = pneg %p2119_p9 }
  0x88   : > { %s2128_s5 = scalar_lea.hbm %s2552_s1, %s2115_s12  ;;  %s1504_s26 = scalar_lea.hbm %s2552_s1, 128 }
  0x89   : > { %s1499_s30 = scalar_lea.hbm %s2128_s5, 64  ;;  %p1505_p12 = scmp.lt.u32.totalorder %s2128_s5, %s2552_s1 }
  0x8a   : > { %p1500_p4 = scmp.ne.s32.totalorder %s2128_s5, %s1499_s30  ;;  %p1506_p13 = scmp.lt.u32.totalorder %s1504_s26, %s1499_s30 }
  0x8b   : > { %s2553_s3 = scalar_select %p2141_p1, 1, 0 }
  0x8c   : > { %p1502_p3 = pnand %p2141_p1, %p1500_p4  ;;  %p1507_p0 = por %p1506_p13, %p1505_p12 }
  0x8d   : > { %p1508_p5 = scmp.lt.u32.totalorder %s1499_s30, %s2128_s5 }
  0x8e   : > { %p1503_p10 = pneg %p1502_p3 }
  0x8f   : > { %p1509_p7 = por %p1508_p5, %p1507_p0 }
  0x91   : > { %p1510_p2 = pnand %p1509_p7, %p1503_p10 }
  0x93   : > { %1513 = shalt.err (!%p1510_p2)
}
  0x94   : > { %s1514_s20 = scalar_lea.vmem %s2131_s7, 64  ;;  %s1869_s19 = smov [#allocation5]  }
  0x95   : > { %p1515_p4 = scmp.ne.s32.totalorder %s2131_s7, %s1514_s20  ;;  %s1519_s10 = sshll.u32 %s1869_s19, 4  ;;  %s1520_s10 = int_to_ptr.vmem [resolvable:$false] %s1519_s10 }
  0x96   : > { %s1521_s14 = scalar_lea.vmem %s1520_s10, 128  ;;  %p1522_p6 = scmp.lt.s32.totalorder %s2131_s7, %s1520_s10 }
  0x97   : > { %p1517_p3 = pnand %p1515_p4, %p2141_p1  ;;  %p1523_p8 = scmp.lt.s32.totalorder %s1521_s14, %s1514_s20 }
  0x99   : > { %p1518_p11 = pneg %p1517_p3  ;;  %p1524_p12 = por %p1523_p8, %p1522_p6 }
  0x9b   : > { %p1525_p13 = pnand %p1524_p12, %p1518_p11 }
  0x9d   : > { %1528 = shalt.err (!%p1525_p13)
}
  0x9e   : > { %1320 = dma.hbm_to_vmem [thread:$0]  (!%p2119_p9), %s2128_s5, 64, %s2131_s7, %s2135_s25  }
  0x9f   : > { %s1529_s29 = scalar_lea.hbm %s2483_s4, 256  ;;  %p2554_p6 = scmp.ne.s32.totalorder %s2538_s13, 0 }
  0xa0   : > { %p1530_p2 = scmp.ne.s32.totalorder %s2483_s4, %s1529_s29  ;;  %p1536_p7 = scmp.lt.u32.totalorder %s1529_s29, %s2483_s4 }
  0xa2   : > { %p1532_p8 = pnand %p1530_p2, %p2554_p6 }
  0xa4   : > { %p1533_p11 = pneg %p1532_p8 }
  0xa6   : > { %p1538_p10 = pnand %p1536_p7, %p1533_p11 }
  0xa8   : > { %1541 = shalt.err (!%p1538_p10)
}
  0xa9   : > { %s1542_s14 = scalar_lea.vmem %s402_s11, 256  ;;  %p1550_p3 = scmp.lt.s32.totalorder %s402_s11, %s402_s11 }
  0xaa   : > { %p1543_p0 = scmp.ne.s32.totalorder %s402_s11, %s1542_s14  ;;  %p1551_p12 = scmp.lt.s32.totalorder %s1542_s14, %s1542_s14 }
  0xac   : > { %p1545_p5 = pnand %p1543_p0, %p2554_p6  ;;  %p1552_p13 = por %p1551_p12, %p1550_p3 }
  0xae   : > { %p1546_p4 = pneg %p1545_p5 }
  0xb0   : > { %p1553_p9 = pnand %p1552_p13, %p1546_p4 }
  0xb2   : > { %1556 = shalt.err (!%p1553_p9)
}
  0xb3   : > { %s1870_s1 = smov 64   ;;  %s1871_s5 = smov 4  }
  0xb4   : > { %p2555_p2 = scmp.ne.s32.totalorder %s2536_s15, 0  ;;  %s1872_s30 = smov [#allocation13]  }
  0xb5   : > { %s425_s29 = sshll.u32 %s1872_s30, 4  ;;  %s1873_s19 = smov [#allocation16]   ;;  %s426_s29 = int_to_ptr.vmem [resolvable:$true] %s425_s29 }
  0xb6   : > { %1298 = dma.hbm_to_vmem [thread:$0]  (!%p2555_p2), %s2483_s4, 256, %s402_s11, [#allocation9], %s1870_s1, %s1870_s1, %s1871_s5  }
  0xb7   : > { %s449_s20 = sshll.u32 %s1873_s19, 4  ;;  %s1557_s21 = scalar_lea.hbm %s2485_s6, 256  ;;  %s450_s20 = int_to_ptr.vmem [resolvable:$true] %s449_s20 }
  0xb8   : > { %p1558_p9 = scmp.ne.s32.totalorder %s2485_s6, %s1557_s21  ;;  %p1564_p7 = scmp.lt.u32.totalorder %s1557_s21, %s2485_s6 }
  0xba   : > { %p1560_p8 = pnand %p1558_p9, %p2554_p6 }
  0xbc   : > { %p1561_p11 = pneg %p1560_p8 }
  0xbe   : > { %p1566_p10 = pnand %p1564_p7, %p1561_p11 }
  0xc0   : > { %1569 = shalt.err (!%p1566_p10)
}
  0xc1   : > { %s1570_s11 = scalar_lea.vmem %s426_s29, 256  ;;  %p1578_p3 = scmp.lt.s32.totalorder %s426_s29, %s426_s29 }
  0xc2   : > { %p1571_p0 = scmp.ne.s32.totalorder %s426_s29, %s1570_s11  ;;  %p1579_p12 = scmp.lt.s32.totalorder %s1570_s11, %s1570_s11 }
  0xc4   : > { %p1573_p5 = pnand %p1571_p0, %p2554_p6  ;;  %p1580_p13 = por %p1579_p12, %p1578_p3 }
  0xc6   : > { %p1574_p4 = pneg %p1573_p5 }
  0xc8   : > { %p1581_p1 = pnand %p1580_p13, %p1574_p4 }
  0xca   : > { %1584 = shalt.err (!%p1581_p1)
}
  0xcb   : > { %1304 = dma.hbm_to_vmem [thread:$0]  (!%p2555_p2), %s2485_s6, 256, %s426_s29, [#allocation12], %s1870_s1, %s1870_s1, %s1871_s5  }
  0xcc   : > { %s1585_s18 = scalar_lea.hbm %s2487_s8, 256 }
  0xcd   : > { %p1586_p9 = scmp.ne.s32.totalorder %s2487_s8, %s1585_s18  ;;  %p1592_p11 = scmp.lt.u32.totalorder %s1585_s18, %s2487_s8 }
  0xcf   : > { %p1588_p1 = pnand %p1586_p9, %p2554_p6 }
  0xd1   : > { %p1589_p8 = pneg %p1588_p1 }
  0xd3   : > { %p1594_p7 = pnand %p1592_p11, %p1589_p8 }
  0xd5   : > { %1597 = shalt.err (!%p1594_p7)
}
  0xd6   : > { %s1598_s10 = scalar_lea.vmem %s450_s20, 256  ;;  %p1606_p4 = scmp.lt.s32.totalorder %s450_s20, %s450_s20 }
  0xd7   : > { %p1599_p10 = scmp.ne.s32.totalorder %s450_s20, %s1598_s10  ;;  %p1607_p3 = scmp.lt.s32.totalorder %s1598_s10, %s1598_s10 }
  0xd9   : > { %p1601_p0 = pnand %p1599_p10, %p2554_p6  ;;  %p1608_p12 = por %p1607_p3, %p1606_p4 }
  0xdb   : > { %p1602_p5 = pneg %p1601_p0 }
  0xdd   : > { %p1609_p13 = pnand %p1608_p12, %p1602_p5 }
  0xdf   : > { %1612 = shalt.err (!%p1609_p13)
}
  0xe0   : > { %1310 = dma.hbm_to_vmem [thread:$0]  (!%p2555_p2), %s2487_s8, 256, %s450_s20, [#allocation15], %s1870_s1, %s1870_s1, %s1871_s5  }
  0xe1   : > { %s1874_s11 = smov [#allocation17]   ;;  %s1613_s17 = scalar_lea.hbm %s2488_s9, 16 }
  0xe2   : > { %s463_s22 = sshll.u32 %s1874_s11, 4  ;;  %p1614_p9 = scmp.ne.s32.totalorder %s2488_s9, %s1613_s17  ;;  %s464_s22 = int_to_ptr.vmem [resolvable:$true] %s463_s22 }
  0xe3   : > { %p1620_p11 = scmp.lt.u32.totalorder %s1613_s17, %s2488_s9 }
  0xe4   : > { %p1616_p1 = pnand %p1614_p9, %p2554_p6 }
  0xe6   : > { %p1617_p8 = pneg %p1616_p1 }
  0xe8   : > { %p1622_p7 = pnand %p1620_p11, %p1617_p8 }
  0xea   : > { %1625 = shalt.err (!%p1622_p7)
}
  0xeb   : > { %s1626_s1 = scalar_lea.vmem %s464_s22, 16  ;;  %s1633_s5 = scalar_lea.vmem %s464_s22, 32 }
  0xec   : > { %p1627_p10 = scmp.ne.s32.totalorder %s464_s22, %s1626_s1  ;;  %p1634_p4 = scmp.lt.s32.totalorder %s464_s22, %s464_s22 }
  0xed   : > { %p1635_p3 = scmp.lt.s32.totalorder %s1633_s5, %s1626_s1 }
  0xee   : > { %p1629_p0 = pnand %p1627_p10, %p2554_p6 }
  0xef   : > { %p1636_p12 = por %p1635_p3, %p1634_p4 }
  0xf0   : > { %p1630_p5 = pneg %p1629_p0 }
  0xf2   : > { %p1637_p13 = pnand %p1636_p12, %p1630_p5 }
  0xf4   : > { %1640 = shalt.err (!%p1637_p13)
}
  0xf5   : > { %1313 = dma.hbm_to_vmem [thread:$0]  (!%p2555_p2), %s2488_s9, 16, %s464_s22, [#allocation18]  }
  0xf6   : > { %s2251_s29 = scalar_lea.hbm %s2479_s0, %s2115_s12  ;;  %s478_s14 = scalar_lea.vmem [#allocation2], %s2112_s24 }
  0xf7   : > { %s486_s11 = sshll.u32 %s478_s14, 4  ;;  %s2556_s15 = sand.u32 1, %s1851_s23   ;;  %s487_s11 = int_to_ptr.vmem [resolvable:$true] %s486_s11 }
  0xf8   : > { %s475_s21 = scalar_lea.sflag [#allocation3], %s2556_s15  ;;  %s1641_s27 = scalar_lea.hbm %s2251_s29, 64 }
  0xf9   : > { %p1642_p6 = scmp.ne.s32.totalorder %s2251_s29, %s1641_s27  ;;  %p2557_p9 = scmp.ne.s32.totalorder %s2553_s3, 0 }
  0xfa   : > { %s1646_s18 = scalar_lea.hbm %s2479_s0, 128  ;;  %p1647_p2 = scmp.lt.u32.totalorder %s2251_s29, %s2479_s0 }
  0xfb   : > { %p1644_p1 = pnand %p1642_p6, %p2557_p9  ;;  %p1648_p11 = scmp.lt.u32.totalorder %s1646_s18, %s1641_s27 }
  0xfc   : > { %p1650_p10 = scmp.lt.u32.totalorder %s1641_s27, %s2251_s29 }
  0xfd   : > { %p1645_p8 = pneg %p1644_p1  ;;  %p1649_p7 = por %p1648_p11, %p1647_p2 }
  0xff   : > { %p1651_p0 = por %p1650_p10, %p1649_p7 }
 0x101   : > { %p1652_p5 = pnand %p1651_p0, %p1645_p8 }
 0x103   : > { %1655 = shalt.err (!%p1652_p5)
}
 0x104   : > { %s1656_s30 = scalar_lea.vmem %s487_s11, 64  ;;  %s1875_s1 = smov [#allocation2]  }
 0x105   : > { %p1657_p4 = scmp.ne.s32.totalorder %s487_s11, %s1656_s30  ;;  %s1661_s5 = sshll.u32 %s1875_s1, 4  ;;  %s1662_s5 = int_to_ptr.vmem [resolvable:$false] %s1661_s5 }
 0x106   : > { %s1663_s20 = scalar_lea.vmem %s1662_s5, 128  ;;  %p1664_p13 = scmp.lt.s32.totalorder %s487_s11, %s1662_s5 }
 0x107   : > { %p1659_p3 = pnand %p1657_p4, %p2557_p9  ;;  %p1665_p6 = scmp.lt.s32.totalorder %s1663_s20, %s1656_s30 }
 0x109   : > { %p1660_p12 = pneg %p1659_p3  ;;  %p1666_p1 = por %p1665_p6, %p1664_p13 }
 0x10b   : > { %p1667_p2 = pnand %p1666_p1, %p1660_p12 }
 0x10d   : > { %1670 = shalt.err (!%p1667_p2)
}
 0x10e   : > { %p2558_p11 = scmp.ne.s32.totalorder %s2551_s16, 0  ;;  %s2277_s13 = scalar_lea.hbm %s2481_s2, %s2115_s12 }
 0x10f   : > { %s516_s14 = scalar_lea.vmem [#allocation7], %s2112_s24  ;;  %s1671_s27 = scalar_lea.hbm %s2277_s13, 64 }
 0x110   : > { %1317 = dma.hbm_to_vmem [thread:$0]  (!%p2558_p11), %s2251_s29, 64, %s487_s11, %s475_s21  }
 0x111   : > { %s524_s15 = sshll.u32 %s516_s14, 4  ;;  %p1672_p8 = scmp.ne.s32.totalorder %s2277_s13, %s1671_s27  ;;  %s525_s15 = int_to_ptr.vmem [resolvable:$true] %s524_s15 }
 0x112   : > { %s1676_s29 = scalar_lea.hbm %s2481_s2, 128  ;;  %p1677_p0 = scmp.lt.u32.totalorder %s2277_s13, %s2481_s2 }
 0x113   : > { %p1674_p7 = pnand %p1672_p8, %p2557_p9  ;;  %p1678_p5 = scmp.lt.u32.totalorder %s1676_s29, %s1671_s27 }
 0x114   : > { %p1680_p3 = scmp.lt.u32.totalorder %s1671_s27, %s2277_s13 }
 0x115   : > { %p1675_p10 = pneg %p1674_p7  ;;  %p1679_p4 = por %p1678_p5, %p1677_p0 }
 0x117   : > { %p1681_p12 = por %p1680_p3, %p1679_p4 }
 0x119   : > { %p1682_p13 = pnand %p1681_p12, %p1675_p10 }
 0x11b   : > { %1685 = shalt.err (!%p1682_p13)
}
 0x11c   : > { %s1686_s24 = scalar_lea.vmem %s525_s15, 64  ;;  %s1876_s12 = smov [#allocation7]  }
 0x11d   : > { %p1687_p6 = scmp.ne.s32.totalorder %s525_s15, %s1686_s24  ;;  %s1691_s18 = sshll.u32 %s1876_s12, 4  ;;  %s1692_s18 = int_to_ptr.vmem [resolvable:$false] %s1691_s18 }
 0x11e   : > { %s1693_s7 = scalar_lea.vmem %s1692_s18, 128  ;;  %p1694_p8 = scmp.lt.s32.totalorder %s525_s15, %s1692_s18 }
 0x11f   : > { %p1689_p1 = pnand %p1687_p6, %p2557_p9  ;;  %p1695_p7 = scmp.lt.s32.totalorder %s1693_s7, %s1686_s24 }
 0x121   : > { %p1690_p2 = pneg %p1689_p1  ;;  %p1696_p11 = por %p1695_p7, %p1694_p8 }
 0x123   : > { %p1697_p0 = pnand %p1696_p11, %p1690_p2 }
 0x125   : > { %1700 = shalt.err (!%p1697_p0)
}
 0x126   : > { %p2559_p5 = scmp.ne.s32.totalorder %s2551_s16, 0  ;;  %p2560_p10 = scmp.ne.s32.totalorder %s2535_s28, 0 }
 0x127   : > { %s2561_s3 = sld [smem:[#allocation32_spill]] (!%p2560_p10) }
 0x128   : > { %1323 = dma.hbm_to_vmem [thread:$0]  (!%p2559_p5), %s2277_s13, 64, %s525_s15, %s2135_s25  }
 0x129   : > { %533 = sbr.rel (%p2560_p10) target bundleno = 615 (0x267), region = 60  ;;  %s2562_s26 = sld [smem:[#allocation38_spill]] (!%p2560_p10) }
 0x12d   : > { %s2301_s30 = sand.u32 (!%p2560_p10), 1, %s2561_s3  }
 0x12e   : > { %s2304_s1 = sshll.u32 (!%p2560_p10), %s2301_s30, 2  ;;  %s536_s5 = scalar_lea.sflag (!%p2560_p10), [#allocation3], %s2301_s30 }
 0x12f   : > { %s539_s20 = scalar_lea.vmem (!%p2560_p10), [#allocation2], %s2304_s1  ;;  %p2563_p9 = scmp.ne.s32.totalorder (!%p2560_p10), %s2562_s26, 0 }
 0x131   : > { %1810 = dma.done.wait (%p2563_p9), %s536_s5, 64  }
 0x132   : > { %1812 = vsyncadd (%p2563_p9), %s536_s5, 4294967232  ;;  %s2564_s25 = sld [smem:[#allocation36_spill]]  ;;  %s548_s19 = scalar_lea.vmem [#allocation5], %s2304_s1 }
 0x138   : > { %s544_s28 = sand.u32 1, %s2564_s25  }
 0x139   : > { %s545_s16 = scalar_lea.sflag [#allocation6], %s544_s28 }
 0x13a   : > { %1814 = dma.done.wait (%p2563_p9), %s545_s16, 128  }
 0x13b   : > { %1816 = vsyncadd (%p2563_p9), %s545_s16, 4294967168  ;;  %s557_s10 = scalar_lea.vmem [#allocation7], %s2304_s1  ;;  %p2565_p11 = scmp.eq.s32.totalorder %s2564_s25, 0 }
 0x13d   : > { %1818 = dma.done.wait (%p2565_p11), [#allocation9], 384   ;;  %p2566_p4 = pmov %p2565_p11 }
 0x13f   : > { %1820 = vsyncadd (%p2566_p4), [#allocation9], 4294966912  ;;  %p2567_p3 = pmov %p2566_p4 }
 0x141   : > { %1822 = dma.done.wait (%p2567_p3), [#allocation12], 272   ;;  %p2568_p12 = pmov %p2567_p3 }
 0x142   : > { %p2569_p13 = pmov %p2567_p3 }
 0x143   : > { %1824 = vsyncadd (%p2568_p12), [#allocation12], 4294967024 }
 0x144   : > { %1826 = dma.done.wait (%p2569_p13), [#allocation15], 272   ;;  %p2570_p6 = pmov %p2567_p3 }
 0x145   : > { %p2571_p1 = pmov %p2567_p3 }
 0x146   : > { %1828 = vsyncadd (%p2570_p6), [#allocation15], 4294967024 }
 0x147   : > { %1830 = dma.done.wait (%p2571_p1), [#allocation18], 16   ;;  %p2572_p2 = pmov %p2571_p1 }
 0x148   : > { %v1877_v0 = vmov 0.0   ;;  %vm1878_vm0 = vmmov 0   ;;  %v1409_v1 = vld [vmem:[#allocation10] sm:$0xff]   ;;  %v1410_v2 = vld [vmem:[#allocation13] sm:$0xff]   ;;  %v1411_v3 = vld [vmem:[#allocation10 + $0x8] sm:$0xff]   ;;  %vm673_vm1 = vcmask 261120  }
 0x149   : > { %1832 = vsyncadd (%p2572_p2), [#allocation18], 4294967280  ;;  %1228 = vmatprep.subr.bf16.mxu0 %v1877_v0  ;;  %1236 = vmatprep.subr.bf16.mxu1 %v1877_v0  ;;  %v1412_v4 = vld [vmem:[#allocation13 + $0x8] sm:$0xff]   ;;  %v1413_v6 = vld [vmem:[#allocation16] sm:$0xff]   ;;  %s2573_s13 = sld [smem:[#allocation33_spill]]  ;;  %s631_s15 = scalar_lea.vmem [#allocation19], %s2304_s1 }
 0x14a   : > { %1232 = vmatprep.mubr.msk.bf16.mxu0 %vm1878_vm0, %v1877_v0  ;;  %1240 = vmatprep.mubr.msk.bf16.mxu1 %vm1878_vm0, %v1877_v0  ;;  %v647_v5 = vld [vmem:[%s539_s20] sm:$0xf]  ;;  %v648_v7 = vld [vmem:[%s548_s19] sm:$0xf]  ;;  %v649_v9 = vld [vmem:[%s557_s10] sm:$0xf] }
 0x14b   : > { %1229 = vmatpush3.bf16.msra.mxu0 %v1409_v1  ;;  %1237 = vmatpush3.bf16.msra.mxu1 %v1410_v2  ;;  %v1414_v8 = vld [vmem:[#allocation16 + $0x8] sm:$0xff]   ;;  %v1203_v11 = vld [vmem:[#allocation14] ss:$0 sm:$0xff]  ;;  %s883_s27 = sshll.u32 %s631_s15, 4  ;;  %v783_v16 = vld [vmem:[#allocation8] sm:$0xff]  ;;  %vm852_vm2 = vcmask 257024   ;;  %s2359_s27 = int_to_ptr.vmem [resolvable:$true] %s883_s27 }
 0x14c   : > { %1230 = vmatprep.subr.bf16.mxu0 %v1877_v0  ;;  %1238 = vmatprep.subr.bf16.mxu1 %v1877_v0  ;;  %v1199_v10 = vld [vmem:[#allocation11] ss:$0 sm:$0xff]  ;;  %s638_s22 = scalar_lea.vmem [#allocation20], %s2304_s1  ;;  %s2574_s29 = sld [smem:[#allocation39_spill]]  ;;  %v1207_v26 = vld [vmem:[#allocation17] ss:$0 sm:$0xff] }
 0x14d   : > { %s897_s17 = sshll.u32 %s638_s22, 4  ;;  %s2575_s24 = sld [smem:[#allocation46_spill]]  ;;  %s2367_s17 = int_to_ptr.vmem [resolvable:$true] %s897_s17 }
 0x14e   : > { %s2577_s26 = sld [smem:[#allocation47_spill]]  ;;  %s859_s16 = scalar_lea.sflag [#allocation4], %s2301_s30 }
 0x14f   : > { %1231 = vmatpush3.bf16.msra.mxu0 %v1411_v3  ;;  %1239 = vmatpush3.bf16.msra.mxu1 %v1412_v4  ;;  %s2347_s14 = sshll.u32 %s2573_s13, 6  ;;  %s1701_s19 = scalar_lea.vmem %s2359_s27, 64 }
 0x150   : > { %1244 = vmatprep.subr.bf16.mxu0 %v1877_v0  ;;  %p1702_p8 = scmp.ne.s32.totalorder %s2359_s27, %s1701_s19  ;;  %s1879_s10 = smov [#allocation19]  }
 0x151   : > { %s1705_s13 = sshll.u32 %s1879_s10, 4  ;;  %s1706_s13 = int_to_ptr.vmem [resolvable:$false] %s1705_s13 }
 0x152   : > { %1233 = vmatmul.mubr.msk.bf16.vlgmr.msra.gmra.mrb[0].mxu0 %vm673_vm1, %v647_v5  ;;  %1241 = vmatmul.mubr.msk.bf16.vlgmr.msra.gmra.mrb[0].mxu1 %vm673_vm1, %v648_v7  ;;  %p2579_p7 = scmp.ne.s32.totalorder %s2574_s29, 0  ;;  %s1707_s11 = scalar_lea.vmem %s1706_s13, 128 }
 0x153   : > { %1245 = vmatpush3.bf16.msra.mxu0 %v1413_v6  ;;  %1248 = vmatprep.mubr.msk.bf16.mxu0 %vm1878_vm0, %v1877_v0  ;;  %s2576_s12 = smov %s2575_s24  ;;  %s2357_s18 = scalar_lea.hbm %s2575_s24, %s2347_s14 }
 0x154   : > { %1246 = vmatprep.subr.bf16.mxu0 %v1877_v0  ;;  %s2578_s5 = smov %s2577_s26  ;;  %s2365_s20 = scalar_lea.hbm %s2577_s26, %s2347_s14 }
 0x155   : > { %p1703_p0 = pnand %p1702_p8, %p2579_p7  ;;  %p1708_p10 = scmp.lt.s32.totalorder %s2359_s27, %s1706_s13 }
 0x156   : > { %p1709_p9 = scmp.lt.s32.totalorder %s1707_s11, %s1701_s19 }
 0x157   : > { %1247 = vmatpush3.bf16.msra.mxu0 %v1414_v8  ;;  %p1704_p5 = pneg %p1703_p0 }
 0x158   : > { %p1710_p11 = por %p1709_p9, %p1708_p10 }
 0x15a   : > { %1249 = vmatmul.mubr.msk.bf16.vlgmr.msra.gmra.mrb[4].mxu0 %vm673_vm1, %v649_v9  ;;  %p1711_p4 = pnand %p1710_p11, %p1704_p5 }
 0x225   : > { %v711_v12 = vpop.f32.mrb[0].mxu0  ;;  %v777_v15 = vpop.f32.mrb[0].mxu1 }
 0x226   : > { %v712_v13 = vadd.f32 %v1199_v10, %v711_v12  ;;  %v1234_v14 = vpop.f32.mrb[1].mxu0  ;;  %v778_v18 = vadd.f32 %v1203_v11, %v777_v15  ;;  %v1242_v19 = vpop.f32.mrb[1].mxu1 }
 0x227   : > { %v714_v17 = vpop.f32.mrb[2].mxu0  ;;  %v780_v22 = vpop.f32.mrb[2].mxu1 }
 0x228   : > { %v851_v20 = vpack.c.bf16 %v712_v13, %v712_v13  ;;  %v1235_v21 = vpop.f32.mrb[3].mxu0  ;;  %v784_v23 = vadd.f32 %v783_v16, %v778_v18  ;;  %v1243_v24 = vpop.f32.mrb[3].mxu1 }
 0x22a   : > { %853 = vst.msk [vmem:[%s631_s15] sm:$0xf] %vm852_vm2, %v851_v20  ;;  %v854_v25 = vpack.c.bf16 %v784_v23, %v784_v23 }
 0x22b   : > { %1714 = shalt.err (!%p1711_p4)
}
 0x22c   : > { %s1715_s30 = scalar_lea.hbm %s2357_s18, 64  ;;  %s1719_s24 = scalar_lea.hbm %s2576_s12, 128 }
 0x22d   : > { %p1716_p3 = scmp.ne.s32.totalorder %s2357_s18, %s1715_s30  ;;  %p1720_p6 = scmp.lt.u32.totalorder %s2357_s18, %s2576_s12 }
 0x22e   : > { %p1721_p1 = scmp.lt.u32.totalorder %s1719_s24, %s1715_s30  ;;  %p1723_p8 = scmp.lt.u32.totalorder %s1715_s30, %s2357_s18 }
 0x22f   : > { %p1717_p12 = pnand %p1716_p3, %p2579_p7 }
 0x230   : > { %p1722_p2 = por %p1721_p1, %p1720_p6 }
 0x231   : > { %p1718_p13 = pneg %p1717_p12 }
 0x232   : > { %p1724_p0 = por %p1723_p8, %p1722_p2 }
 0x234   : > { %p1725_p5 = pnand %p1724_p0, %p1718_p13 }
 0x236   : > { %1728 = shalt.err (!%p1725_p5)
}
 0x237   : > { %1286 = dma.vmem_to_hbm [thread:$0]  (%p2579_p7), %s2359_s27, 64, %s2357_s18, %s859_s16   ;;  %v845_v27 = vpop.f32.mrb[4].mxu0  ;;  %855 = vst.msk [vmem:[%s638_s22] sm:$0xf] %vm852_vm2, %v854_v25 }
 0x238   : > { %s645_s26 = scalar_lea.vmem [#allocation22], %s2304_s1  ;;  %v846_v28 = vadd.f32 %v1207_v26, %v845_v27  ;;  %v1250_v29 = vpop.f32.mrb[5].mxu0  ;;  %s2402_s10 = scalar_lea.sflag [#allocation21], %s544_s28 }
 0x239   : > { %s2398_s19 = sshll.u32 %s645_s26, 4  ;;  %s1729_s13 = scalar_lea.vmem %s2367_s17, 64  ;;  %s912_s19 = int_to_ptr.vmem [resolvable:$true] %s2398_s19 }
 0x23a   : > { %p1730_p10 = scmp.ne.s32.totalorder %s2367_s17, %s1729_s13  ;;  %s1880_s27 = smov [#allocation20]  }
 0x23b   : > { %s1733_s18 = sshll.u32 %s1880_s27, 4  ;;  %s1734_s18 = int_to_ptr.vmem [resolvable:$false] %s1733_s18 }
 0x23c   : > { %p1731_p9 = pnand %p1730_p10, %p2579_p7  ;;  %s1735_s16 = scalar_lea.vmem %s1734_s18, 128 }
 0x23d   : > { %p1736_p4 = scmp.lt.s32.totalorder %s2367_s17, %s1734_s18  ;;  %p1737_p3 = scmp.lt.s32.totalorder %s1735_s16, %s1729_s13 }
 0x23e   : > { %p1732_p11 = pneg %p1731_p9 }
 0x23f   : > { %p1738_p12 = por %p1737_p3, %p1736_p4 }
 0x241   : > { %p1739_p13 = pnand %p1738_p12, %p1732_p11 }
 0x243   : > { %1742 = shalt.err (!%p1739_p13)
}
 0x244   : > { %s1743_s25 = scalar_lea.hbm %s2365_s20, 64  ;;  %s1747_s11 = scalar_lea.hbm %s2578_s5, 128 }
 0x245   : > { %p1744_p6 = scmp.ne.s32.totalorder %s2365_s20, %s1743_s25  ;;  %p1748_p8 = scmp.lt.u32.totalorder %s2365_s20, %s2578_s5 }
 0x246   : > { %p1749_p0 = scmp.lt.u32.totalorder %s1747_s11, %s1743_s25  ;;  %p1751_p10 = scmp.lt.u32.totalorder %s1743_s25, %s2365_s20 }
 0x247   : > { %p1745_p1 = pnand %p1744_p6, %p2579_p7 }
 0x248   : > { %p1750_p5 = por %p1749_p0, %p1748_p8 }
 0x249   : > { %p1746_p2 = pneg %p1745_p1 }
 0x24a   : > { %p1752_p9 = por %p1751_p10, %p1750_p5 }
 0x24c   : > { %p1753_p11 = pnand %p1752_p9, %p1746_p2 }
 0x24e   : > { %1756 = shalt.err (!%p1753_p11)
}
 0x24f   : > { %1287 = dma.vmem_to_hbm [thread:$0]  (%p2579_p7), %s2367_s17, 64, %s2365_s20, %s2402_s10   ;;  %v848_v30 = vpop.f32.mrb[6].mxu0  ;;  %v856_v31 = vpack.c.bf16 %v846_v28, %v846_v28 }
 0x250   : > { %v1251_v32 = vpop.f32.mrb[7].mxu0  ;;  %s2580_s7 = sld [smem:[#allocation48_spill]]  ;;  %s1757_s13 = scalar_lea.vmem %s912_s19, 64 }
 0x251   : > { %857 = vst.msk [vmem:[%s645_s26] sm:$0xf] %vm852_vm2, %v856_v31  ;;  %p1758_p4 = scmp.ne.s32.totalorder %s912_s19, %s1757_s13  ;;  %s1881_s27 = smov [#allocation22]  }
 0x252   : > { %s1761_s18 = sshll.u32 %s1881_s27, 4  ;;  %s1762_s18 = int_to_ptr.vmem [resolvable:$false] %s1761_s18 }
 0x253   : > { %p1759_p3 = pnand %p1758_p4, %p2579_p7  ;;  %s1763_s17 = scalar_lea.vmem %s1762_s18, 128 }
 0x254   : > { %p1764_p13 = scmp.lt.s32.totalorder %s912_s19, %s1762_s18  ;;  %p1765_p6 = scmp.lt.s32.totalorder %s1763_s17, %s1757_s13 }
 0x255   : > { %p1760_p12 = pneg %p1759_p3 }
 0x256   : > { %s2430_s3 = scalar_lea.hbm %s2580_s7, %s2347_s14  ;;  %p1766_p1 = por %p1765_p6, %p1764_p13 }
 0x258   : > { %p1767_p2 = pnand %p1766_p1, %p1760_p12 }
 0x25a   : > { %1770 = shalt.err (!%p1767_p2)
}
 0x25b   : > { %s1771_s1 = scalar_lea.hbm %s2430_s3, 64  ;;  %s1775_s26 = scalar_lea.hbm %s2580_s7, 128 }
 0x25c   : > { %p1772_p8 = scmp.ne.s32.totalorder %s2430_s3, %s1771_s1  ;;  %p1776_p10 = scmp.lt.u32.totalorder %s2430_s3, %s2580_s7 }
 0x25d   : > { %p1777_p9 = scmp.lt.u32.totalorder %s1775_s26, %s1771_s1  ;;  %p1779_p4 = scmp.lt.u32.totalorder %s1771_s1, %s2430_s3 }
 0x25e   : > { %p1773_p0 = pnand %p1772_p8, %p2579_p7 }
 0x25f   : > { %p1778_p11 = por %p1777_p9, %p1776_p10 }
 0x260   : > { %p1774_p5 = pneg %p1773_p0 }
 0x261   : > { %p1780_p3 = por %p1779_p4, %p1778_p11 }
 0x263   : > { %p1781_p12 = pnand %p1780_p3, %p1774_p5 }
 0x265   : > { %1784 = shalt.err (!%p1781_p12)
}
 0x266   : > { %1288 = dma.vmem_to_hbm [thread:$0]  (%p2579_p7), %s912_s19, 64, %s2430_s3, %s2402_s10  }
 0x267 PF: > { %s2581_s28 = sld [smem:[#allocation31_spill]]  ;;  %s2582_s22 = sld [smem:[#allocation41_spill]] }
 0x268   : > { %s2583_s11 = sld [smem:[#allocation35_spill]] }
 0x26d   : > { %s923_s30 = sand.u32 1, %s2581_s28   ;;  %p2584_p13 = scmp.ne.s32.totalorder %s2582_s22, 0 }
 0x26e   : > { %p2585_p6 = scmp.ge.s32.totalorder %s2583_s11, 2  ;;  %s924_s15 = scalar_lea.sflag [#allocation4], %s923_s30 }
 0x270   : > { %p1325_p1 = pnand %p2585_p6, %p2584_p13 }
 0x272   : > { %1834 = dma.done.wait (!%p1325_p1), %s924_s15, 64  }
 0x273   : > { %1836 = vsyncadd (!%p1325_p1), %s924_s15, 4294967232  ;;  %s2586_s21 = sadd.s32 4294967294, %s2583_s11  }
 0x274   : > { %s932_s24 = sand.u32 1, %s2586_s21  }
 0x275   : > { %s933_s13 = scalar_lea.sflag [#allocation21], %s932_s24 }
 0x276   : > { %1838 = dma.done.wait (!%p1325_p1), %s933_s13, 128  }
 0x277   : > { %1840 = vsyncadd (!%p1325_p1), %s933_s13, 4294967168  ;;  %s39_s26 = sadd.s32 1, %s2583_s11   ;;  %s2587_s21 = sld [smem:[#allocation32_spill]] }
 0x278   : > { %p36_p7 = scmp.ge.s32.totalorder %s39_s26, 4   ;;  %s2588_s29 = sld [smem:[#allocation40_spill]] }
 0x279   : > { %s2589_s24 = sld [smem:[#allocation34_spill]]  ;;  %s2590_s25 = sld [smem:[#allocation37_spill]] }
 0x27a   : > { %s2591_s22 = smov %s1851_s23  ;;  %38 = sbr.rel (!%p36_p7) target bundleno = 22 (0x16), region = 190 }
 0x27e   : > { %s2592_s23 = smov %s2588_s29 }
 0x281   :  { %947 = vsyncpa [#allocation3], 1 }
 0x282   :  { %949 = vsyncpa [#allocation3 + $0x1], 1 }
 0x283   :  { %950 = vsyncpa [#allocation6], 1 }
 0x284   :  { %952 = vsyncpa [#allocation6 + $0x1], 1 }
 0x285   :  { %953 = vsyncpa [#allocation9], 1 }
 0x286   :  { %954 = vsyncpa [#allocation12], 1 }
 0x287   :  { %955 = vsyncpa [#allocation15], 1 }
 0x288   :  { %956 = vsyncpa [#allocation18], 1 }
 0x289   :  { %957 = vsyncpa [#allocation4], 1 }
 0x28a   :  { %959 = vsyncpa [#allocation4 + $0x1], 1 }
 0x28b   :  { %960 = vsyncpa [#allocation21], 1 }
 0x28c   :  { %962 = vsyncpa [#allocation21 + $0x1], 1 }

</bundles_post_ra>
